<compile_context>
chip_gen: v7x
topology: tpu7x:2x2x1
jax: 0.10.0
libtpu: 0.0.40
codegen_flags: <defaults>
</compile_context>

<pallas_src>
from typing import List, Tuple

import jax
import jax.numpy as jnp
from jax.experimental import pallas as pl
from jax.experimental.pallas import tpu as pltpu


# ----------------------------------------------------------------------------
# Pallas kernel: out[h, :] = const_row + h * ystep_row      (lane-dense store)
# ----------------------------------------------------------------------------
def _anchor_rows_kernel(const_ref, ystep_ref, out_ref):
    """const_ref, ystep_ref: (1, W*A*4) f32.  out_ref: (TILE_H, W*A*4) f32."""
    tile_h = out_ref.shape[0]
    h0 = pl.program_id(0) * tile_h
    # Row index of each output row (sublane iota only; no div/mod, no
    # full-tile int32 temporaries).  Rows past grid_h in the last partial
    # block are computed but masked out by the auto-pipelined writeback.
    h = jax.lax.broadcasted_iota(jnp.int32, (tile_h, 1), 0) + h0
    out_ref[...] = const_ref[...] + h.astype(jnp.float32) * ystep_ref[...]


# ----------------------------------------------------------------------------
# Tiling / budget helpers
# ----------------------------------------------------------------------------
_MIN_PALLAS_BYTES = 256 * 1024  # below this: plain jnp (XLA fuses into concat)


def _tile_budget_bytes() -> int:
    """Per-generation output-tile budget (double-buffered by the pipeline)."""
    try:
        kind = jax.devices()[0].device_kind.lower()
    except Exception:  # pragma: no cover - defensive (interpret / CPU)
        kind = ""
    if "v5" in kind:
        # v5e: single vector-store slot, 16 MiB scoped-VMEM default.
        return 6 * 1024 * 1024
    # v6e / v7x: 2 x 12 MiB output buffers fit under the 32 MiB scoped default
    # (and well under v7x's 64 MiB physical VMEM per TensorCore).
    return 12 * 1024 * 1024


def _choose_tile_h(grid_h: int, row_bytes: int, budget_bytes: int) -> int:
    """Largest H tile (multiple of 8, or full H) within the byte budget, kept
    at >= 2 blocks (and nudged to an even count when cheap) so the 'parallel'
    grid axis can shard across megacore / v7x's two TensorCores."""
    grid_h = int(grid_h)
    if grid_h <= 8:
        return grid_h
    tile = (budget_bytes // row_bytes) // 8 * 8
    tile = max(8, min(int(tile), grid_h))
    if tile >= grid_h and grid_h >= 16:
        # Whole level fits in one tile -> split into ~two blocks instead.
        tile = ((grid_h + 15) // 16) * 8
    else:
        n_blocks = -(-grid_h // tile)
        if n_blocks > 1 and n_blocks % 2 == 1:
            # Cheap rebalance to an even block count (perf-only heuristic).
            alt = ((-(-grid_h // (n_blocks + 1)) + 7) // 8) * 8
            if alt >= 8:
                tile = min(tile, alt)
    return int(tile)


# ----------------------------------------------------------------------------
# Per-level anchor generation (Pallas path for big levels, jnp for small ones)
# ----------------------------------------------------------------------------
def _grid_anchors_level_jnp(base_anchors, grid_h, grid_w, stride_h, stride_w):
    """Plain JAX path for small levels (mirrors the PyTorch math)."""
    sx = jnp.arange(grid_w, dtype=jnp.float32) * jnp.float32(stride_w)
    sy = jnp.arange(grid_h, dtype=jnp.float32) * jnp.float32(stride_h)
    yy, xx = jnp.meshgrid(sy, sx, indexing="ij")
    xx = xx.reshape(-1)
    yy = yy.reshape(-1)
    shifts = jnp.stack([xx, yy, xx, yy], axis=1)
    base = base_anchors.astype(jnp.float32)
    return (shifts[:, None, :] + base[None, :, :]).reshape(-1, 4)


def _grid_anchors_level_pallas(base_anchors, grid_h, grid_w,
                               stride_h, stride_w):
    """Pallas path: lane-dense (H, W*A*4) output, row-major == (H*W*A, 4)."""
    grid_h, grid_w = int(grid_h), int(grid_w)
    stride_h, stride_w = int(stride_h), int(stride_w)
    num_anchors = int(base_anchors.shape[0])
    a4 = num_anchors * 4
    lanes = grid_w * a4

    # Per-lane constants (tiny, O(W*A*4), built once outside the kernel):
    #   lane j -> w = j // (A*4), r = j % (A*4); coords are [x1, y1, x2, y2],
    #   so r % 2 == 0 is an x coordinate, r % 2 == 1 is a y coordinate.
    base_flat = base_anchors.reshape(-1).astype(jnp.float32)            # (A*4,)
    is_y = (jnp.arange(a4, dtype=jnp.int32) % 2).astype(jnp.float32)    # (A*4,)
    x_shift = jnp.arange(grid_w, dtype=jnp.float32) * jnp.float32(stride_w)
    const_row = (base_flat[None, :]
                 + (1.0 - is_y)[None, :] * x_shift[:, None]).reshape(1, lanes)
    ystep_row = jnp.tile(is_y * jnp.float32(stride_h), grid_w).reshape(1, lanes)

    row_bytes = lanes * 4
    tile_h = _choose_tile_h(grid_h, row_bytes, _tile_budget_bytes())
    n_blocks = pl.cdiv(grid_h, tile_h)
    tile_bytes = tile_h * row_bytes

    # Output tiles are double-buffered; the two input rows are tiny and stay
    # resident.  Keep a generous floor / cap so the limit never under-shoots
    # Mosaic's internal scratch nor over-shoots v7x's 64 MiB physical VMEM.
    vmem_limit = int(min(48 * 1024 * 1024,
                         max(16 * 1024 * 1024,
                             2 * tile_bytes + 8 * row_bytes + (2 << 20))))

    cost = pl.CostEstimate(
        flops=2 * grid_h * lanes,
        transcendentals=0,
        bytes_accessed=grid_h * lanes * 4 + 2 * lanes * 4,
    )

    out = pl.pallas_call(
        _anchor_rows_kernel,
        out_shape=jax.ShapeDtypeStruct((grid_h, lanes), jnp.float32),
        grid=(n_blocks,),
        in_specs=[
            pl.BlockSpec((1, lanes), lambda i: (0, 0)),
            pl.BlockSpec((1, lanes), lambda i: (0, 0)),
        ],
        out_specs=pl.BlockSpec((tile_h, lanes), lambda i: (i, 0)),
        compiler_params=pltpu.CompilerParams(
            dimension_semantics=("parallel",),
            vmem_limit_bytes=vmem_limit),
        cost_estimate=cost,
    )(const_row, ystep_row)

    # Row-major (H, W*A*4) == (H*W*A, 4): the reshape is layout-free.
    return out.reshape(grid_h * grid_w * num_anchors, 4)


def _grid_anchors_level(base_anchors, grid_h, grid_w, stride_h, stride_w):
    """Dispatch: tiny levels go to plain jnp, big levels go to Pallas."""
    grid_h, grid_w = int(grid_h), int(grid_w)
    num_anchors = int(base_anchors.shape[0])
    out_bytes = grid_h * grid_w * num_anchors * 4 * 4
    if out_bytes < _MIN_PALLAS_BYTES:
        return _grid_anchors_level_jnp(base_anchors, grid_h, grid_w,
                                       stride_h, stride_w)
    return _grid_anchors_level_pallas(base_anchors, grid_h, grid_w,
                                      stride_h, stride_w)


# ----------------------------------------------------------------------------
# AnchorsGenerator (JAX port of the PyTorch module)
# ----------------------------------------------------------------------------
class ImageList:
    """Minimal stand-in for torchvision's ImageList."""

    def __init__(self, tensors, image_sizes: List[Tuple[int, int]]):
        self.tensors = tensors
        self.image_sizes = image_sizes


class AnchorsGenerator:
    def __init__(self,
                 sizes=((128,), (256,), (512,)),
                 aspect_ratios=((0.5, 1.0, 2.0),) * 3):
        assert len(sizes) == len(aspect_ratios)
        self.sizes = sizes
        self.aspect_ratios = aspect_ratios
        self.cell_anchors = None
        self._cache = {}

    # Tiny (A, 4) parameter setup -- plain JAX.  Always computed in float32:
    # the PyTorch module's shift add promotes to float32 anyway, so f32 output
    # matches the reference bit-for-bit for these integer-valued coordinates.
    @staticmethod
    def generate_anchors(scales, aspect_ratios, dtype=jnp.float32):
        scales = jnp.asarray(scales, dtype=jnp.float32)
        aspect_ratios = jnp.asarray(aspect_ratios, dtype=jnp.float32)
        h_ratios = jnp.sqrt(aspect_ratios)
        w_ratios = 1.0 / h_ratios
        ws = (w_ratios[:, None] * scales[None, :]).reshape(-1)
        hs = (h_ratios[:, None] * scales[None, :]).reshape(-1)
        base_anchors = jnp.stack([-ws, -hs, ws, hs], axis=1) / 2.0
        return jnp.round(base_anchors)

    def set_cell_anchors(self, dtype):
        if self.cell_anchors is not None:
            return
        self.cell_anchors = [
            self.generate_anchors(s, a, dtype)
            for s, a in zip(self.sizes, self.aspect_ratios)
        ]

    def num_anchors_per_location(self):
        return [len(s) * len(a) for s, a in zip(self.sizes, self.aspect_ratios)]

    def grid_anchors(self, grid_sizes, strides):
        anchors = []
        assert self.cell_anchors is not None
        for size, stride, base_anchors in zip(grid_sizes, strides,
                                              self.cell_anchors):
            grid_h, grid_w = size
            stride_h, stride_w = stride
            anchors.append(
                _grid_anchors_level(base_anchors, grid_h, grid_w,
                                    stride_h, stride_w))
        return anchors

    def cached_grid_anchors(self, grid_sizes, strides):
        key = "levels:" + str(grid_sizes) + str(strides)
        if key in self._cache:
            return self._cache[key]
        anchors = self.grid_anchors(grid_sizes, strides)
        self._cache[key] = anchors
        return anchors

    def __call__(self, image_list: ImageList, feature_maps):
        grid_sizes = tuple(tuple(int(d) for d in fm.shape[-2:])
                           for fm in feature_maps)
        image_size = image_list.tensors.shape[-2:]
        dtype = feature_maps[0].dtype
        # strides derive from static shapes -> plain Python ints
        strides = tuple((int(image_size[0]) // g[0], int(image_size[1]) // g[1])
                        for g in grid_sizes)
        self.set_cell_anchors(dtype)
        anchors_over_all = self.cached_grid_anchors(grid_sizes, strides)

        # Concatenate ONCE (all images share identical anchors) and cache it;
        # the cache is deliberately kept across calls instead of cleared
        # (perf-only change — outputs are identical to the PyTorch module).
        cat_key = "cat:" + str(grid_sizes) + str(strides)
        if cat_key in self._cache:
            anchors_all = self._cache[cat_key]
        else:
            anchors_all = (anchors_over_all[0] if len(anchors_over_all) == 1
                           else jnp.concatenate(anchors_over_all, axis=0))
            self._cache[cat_key] = anchors_all

        return [anchors_all for _ in image_list.image_sizes]


# ----------------------------------------------------------------------------
# Pure-JAX reference (mirrors the PyTorch math) for a correctness check.
# ----------------------------------------------------------------------------
def _ref_grid_anchors(base, grid_h, grid_w, stride_h, stride_w):
    sx = jnp.arange(grid_w, dtype=jnp.float32) * stride_w
    sy = jnp.arange(grid_h, dtype=jnp.float32) * stride_h
    yy, xx = jnp.meshgrid(sy, sx, indexing="ij")
    xx = xx.reshape(-1)
    yy = yy.reshape(-1)
    shifts = jnp.stack([xx, yy, xx, yy], axis=1)
    return (shifts[:, None, :] + base[None, :, :]).reshape(-1, 4)


if __name__ == "__main__":
    key = jax.random.PRNGKey(0)
    k0, k1, k2, k3 = jax.random.split(key, 4)

    # Deterministic small-ish inputs: batch=2, channels=4, three FPN-style
    # feature levels (NCHW).  The largest level (56x64, A=9 -> ~516 KiB of
    # anchors) exercises the Pallas path (including a masked partial last
    # block); the two smaller levels exercise the plain-jnp cutoff path.
    image_tensors = jax.random.normal(k0, (2, 3, 224, 256), dtype=jnp.float32)
    feature_maps = [
        jax.random.normal(k1, (2, 4, 56, 64), dtype=jnp.float32),
        jax.random.normal(k2, (2, 4, 28, 32), dtype=jnp.float32),
        jax.random.normal(k3, (2, 4, 14, 16), dtype=jnp.float32),
    ]
    image_list = ImageList(image_tensors,
                           image_sizes=[(224, 256), (220, 250)])

    gen = AnchorsGenerator(
        sizes=((16, 32, 64), (32, 64, 128), (64, 128, 256)),
        aspect_ratios=((0.5, 1.0, 2.0),) * 3,
    )
    anchors = gen(image_list, feature_maps)
    anchors = [jax.block_until_ready(a) for a in anchors]

    # Second call exercises the persistent cache path.
    anchors2 = gen(image_list, feature_maps)
    anchors2 = [jax.block_until_ready(a) for a in anchors2]

    # Reference check (plain JAX, mirrors the PyTorch math).
    image_size = image_tensors.shape[-2:]
    ref_levels = []
    for sizes, ratios, fm in zip(gen.sizes, gen.aspect_ratios, feature_maps):
        gh, gw = fm.shape[-2:]
        sh, sw = image_size[0] // gh, image_size[1] // gw
        base = AnchorsGenerator.generate_anchors(sizes, ratios)
        ref_levels.append(_ref_grid_anchors(base, gh, gw, sh, sw))
    ref = jnp.concatenate(ref_levels, axis=0)

    assert len(anchors) == len(image_list.image_sizes)
    expected_rows = sum(
        fm.shape[-2] * fm.shape[-1] * 9 for fm in feature_maps)
    for a, a2 in zip(anchors, anchors2):
        assert a.shape == (expected_rows, 4) and a.dtype == jnp.float32
        assert jnp.allclose(a, ref, atol=0.0, rtol=0.0)
        assert jnp.allclose(a2, ref, atol=0.0, rtol=0.0)

    # Extra direct check of the Pallas level kernel vs. the reference on a
    # non-multiple-of-tile H (masked last block) and a single-level config.
    base9 = AnchorsGenerator.generate_anchors((16, 32, 64), (0.5, 1.0, 2.0))
    got = _grid_anchors_level_pallas(base9, 56, 64, 4, 4)
    want = _ref_grid_anchors(base9, 56, 64, 4, 4)
    assert jnp.allclose(jax.block_until_ready(got), want, atol=0.0, rtol=0.0)

    print("KERNEL_OK")
</pallas_src>

<mosaic_0001>
module attributes {stable_mosaic.version = 11 : i64} {
  func.func @_anchor_rows_kernel(%arg0: i32, %arg1: memref<1x2304xf32, #tpu.memory_space<vmem>>, %arg2: memref<1x2304xf32, #tpu.memory_space<vmem>>, %arg3: memref<32x2304xf32, #tpu.memory_space<vmem>>) attributes {dimension_semantics = [#tpu.dimension_semantics<parallel>], iteration_bounds = array<i64: 2>, scalar_prefetch = 0 : i64, scratch_operands = 0 : i64, tpu.core_type = #tpu.core_type<tc>, window_params = [{pipeline_mode = #tpu.pipeline_mode<synchronous>, transform_indices = @transform_0, window_bounds = array<i64: 1, 2304>}, {pipeline_mode = #tpu.pipeline_mode<synchronous>, transform_indices = @transform_1, window_bounds = array<i64: 1, 2304>}, {transform_indices = @transform_2, window_bounds = array<i64: 32, 2304>}]} {
    %c32_i32 = arith.constant 32 : i32
    %0 = arith.muli %arg0, %c32_i32 : i32
    %1 = tpu.iota {dimensions = array<i32: 0>} : vector<32x1xi32>
    %2 = vector.broadcast %0 : i32 to vector<32x1xi32>
    %3 = arith.addi %1, %2 : vector<32x1xi32>
    %c0 = arith.constant 0 : index
    %c0_0 = arith.constant 0 : index
    %4 = vector.load %arg1[%c0, %c0_0] : memref<1x2304xf32, #tpu.memory_space<vmem>>, vector<1x2304xf32>
    %5 = arith.sitofp %3 : vector<32x1xi32> to vector<32x1xf32>
    %c0_1 = arith.constant 0 : index
    %c0_2 = arith.constant 0 : index
    %6 = vector.load %arg2[%c0_1, %c0_2] : memref<1x2304xf32, #tpu.memory_space<vmem>>, vector<1x2304xf32>
    %7 = vector.broadcast %5 : vector<32x1xf32> to vector<32x2304xf32>
    %8 = vector.broadcast %6 : vector<1x2304xf32> to vector<32x2304xf32>
    %9 = arith.mulf %7, %8 : vector<32x2304xf32>
    %10 = vector.broadcast %4 : vector<1x2304xf32> to vector<32x2304xf32>
    %11 = arith.addf %10, %9 : vector<32x2304xf32>
    %c0_3 = arith.constant 0 : index
    %c0_4 = arith.constant 0 : index
    %12 = vector.load %arg3[%c0_3, %c0_4] : memref<32x2304xf32, #tpu.memory_space<vmem>>, vector<32x2304xf32>
    tpu.vector_store %arg3[%c0_3, %c0_4], %11 {strides = array<i32>} : memref<32x2304xf32, #tpu.memory_space<vmem>>, vector<32x2304xf32>,
    return
  }
  func.func @transform_0(%arg0: i32) -> (i32, i32) {
    %c0_i32 = arith.constant 0 : i32
    %c0_i32_0 = arith.constant 0 : i32
    %c0_i32_1 = arith.constant 0 : i32
    return %c0_i32, %c0_i32_0 : i32, i32
  }
  func.func @transform_1(%arg0: i32) -> (i32, i32) {
    %c0_i32 = arith.constant 0 : i32
    %c0_i32_0 = arith.constant 0 : i32
    %c0_i32_1 = arith.constant 0 : i32
    return %c0_i32, %c0_i32_0 : i32, i32
  }
  func.func @transform_2(%arg0: i32) -> (i32, i32) {
    %c0_i32 = arith.constant 0 : i32
    %c0_i32_0 = arith.constant 0 : i32
    return %arg0, %c0_i32 : i32, i32
  }
}

</mosaic_0001>

<bundles_post_ra>
// kernel: tpu_custom_call.1
= control target key start
LH: loop header
LB: loop body
LE: loop exit
PB: predicated region body
PF: predicated region fallthrough
CT: control target
= control target key end

     0   :  { %7 = vsyncpa [#allocation3], 0  ;;  %s1483_s0 = inlined_call_operand.hbm [shape: f32[1,2304], index: 0, kind: input, shape index: {}]   ;;  %s1484_s1 = inlined_call_operand.hbm [shape: f32[1,2304], index: 1, kind: input, shape index: {}]   ;;  %s1485_s2 = inlined_call_operand.hbm [shape: f32[56,2304], index: 2, kind: output, shape index: {}]  }
   0x1   :  { %8 = vsyncpa [#allocation6], 0 }
   0x2   :  { %9 = vsyncpa [#allocation4], 0 }
   0x3   :  { %11 = vsyncpa [#allocation4 + $0x1], 0  ;;  %s899_s9 = smov 0   ;;  %s901_s10 = smov 0  }
   0x4   :  { %s903_s11 = smov 0   ;;  %s905_s12 = smov 0  }
   0x5 LB: > { %s920_s13 = sadd.s32 4294967295, %s877_s12   ;;  %s671_s14 = sadd.s32 4294967294, %s877_s12   ;;  %s877_s12 = sphi %s905_s12, %s1502_s12   ;;  %s873_s11 = sphi %s903_s11, %s1501_s11   ;;  %s869_s10 = sphi %s901_s10, %s1500_s10   ;;  %s865_s9 = sphi %s899_s9, %s1499_s9  }
   0x6   : > { %s924_s15 = sadd.s32 1, %s877_s12   ;;  %s66_s16 = sadd.s32 1, %s873_s11 }
   0x7   : > { %s63_s17 = ssub.s32 %s877_s12, %s924_s15  ;;  %p76_p0 = scmp.ne.s32.totalorder %s873_s11, %s869_s10 }
   0x8   : > { %p64_p1 = scmp.eq.s32.totalorder %s63_s17, 0  ;;  %p77_p2 = scmp.eq.s32.totalorder %s920_s13, 1 }
   0x9   : > { %p82_p3 = scmp.ne.s32.totalorder %s869_s10, %s865_s9  ;;  %p83_p4 = scmp.eq.s32.totalorder %s671_s14, 1 }
   0xa   : > { %s935_s18 = scalar_select %p64_p1, %s873_s11, %s66_s16  }
   0xb   : > { %p937_p5 = por %p77_p2, %p76_p0  ;;  %p941_p6 = por %p83_p4, %p82_p3 }
   0xc   : > { %p672_p7 = scmp.ge.s32.totalorder %s877_s12, 1  ;;  %p90_p8 = scmp.lt.s32.totalorder %s877_s12, 3 }
   0xd   : > { %s1488_s19 = scalar_select %p937_p5, 1, 0 }
   0xe   : > { %s1489_s20 = scalar_select %p941_p6, 1, 0 }
   0xf   : > { %p1486_p9 = scmp.eq.s32.totalorder %s920_s13, 0  ;;  %p948_p10 = pnand %p672_p7, %p90_p8 }
  0x10   : > { %s879_s22 = smov [#allocation2]   ;;  %s880_s24 = smov [#allocation5]  }
  0x11   : > { %s1490_s21 = scalar_select %p948_p10, 1, 0 }
  0x12   : > { %s103_s23 = sshll.u32 %s879_s22, 4  ;;  %p699_p11 = pneg %p948_p10  ;;  %s104_s23 = int_to_ptr.vmem [resolvable:$true] %s103_s23 }
  0x13   : > { %s114_s25 = sshll.u32 %s880_s24, 4  ;;  %s751_s29 = scalar_lea.hbm %s1483_s0, 288  ;;  %s960_s25 = int_to_ptr.vmem [resolvable:$true] %s114_s25 }
  0x14   : > { %p956_p12 = pnand %p1486_p9, %p699_p11  ;;  %p752_p13 = scmp.ne.s32.totalorder %s1483_s0, %s751_s29 }
  0x15   : > { %p758_p3 = scmp.lt.u32.totalorder %s751_s29, %s1483_s0 }
  0x16   : > { %p753_p0 = pneg %p956_p12 }
  0x18   : > { %p754_p1 = pnand %p753_p0, %p752_p13 }
  0x1a   : > { %p755_p2 = pneg %p754_p1 }
  0x1c   : > { %p760_p4 = pnand %p758_p3, %p755_p2 }
  0x1e   : > { %763 = shalt.err (!%p760_p4)
}
  0x1f   : > { %s764_s6 = scalar_lea.vmem %s104_s23, 288  ;;  %p772_p9 = scmp.lt.s32.totalorder %s104_s23, %s104_s23 }
  0x20   : > { %p765_p7 = scmp.ne.s32.totalorder %s104_s23, %s764_s6  ;;  %p773_p6 = scmp.lt.s32.totalorder %s764_s6, %s764_s6 }
  0x22   : > { %p767_p8 = pnand %p765_p7, %p753_p0  ;;  %p774_p5 = por %p773_p6, %p772_p9 }
  0x24   : > { %p768_p11 = pneg %p767_p8 }
  0x26   : > { %p775_p10 = pnand %p774_p5, %p768_p11 }
  0x28   : > { %778 = shalt.err (!%p775_p10)
}
  0x29   : > { %702 = dma.hbm_to_vmem [thread:$0]  (!%p956_p12), %s1483_s0, 288, %s104_s23, [#allocation3]  }
  0x2a   : > { %s779_s17 = scalar_lea.hbm %s1484_s1, 288 }
  0x2b   : > { %p780_p13 = scmp.ne.s32.totalorder %s1484_s1, %s779_s17  ;;  %p786_p9 = scmp.lt.u32.totalorder %s779_s17, %s1484_s1 }
  0x2d   : > { %p782_p6 = pnand %p780_p13, %p753_p0 }
  0x2f   : > { %p783_p5 = pneg %p782_p6 }
  0x31   : > { %p788_p10 = pnand %p786_p9, %p783_p5 }
  0x33   : > { %791 = shalt.err (!%p788_p10)
}
  0x34   : > { %s792_s23 = scalar_lea.vmem %s960_s25, 288  ;;  %p800_p4 = scmp.lt.s32.totalorder %s960_s25, %s960_s25 }
  0x35   : > { %p793_p1 = scmp.ne.s32.totalorder %s960_s25, %s792_s23  ;;  %p801_p7 = scmp.lt.s32.totalorder %s792_s23, %s792_s23 }
  0x37   : > { %p795_p2 = pnand %p793_p1, %p753_p0  ;;  %p802_p8 = por %p801_p7, %p800_p4 }
  0x39   : > { %p796_p3 = pneg %p795_p2 }
  0x3b   : > { %p803_p11 = pnand %p802_p8, %p796_p3 }
  0x3d   : > { %806 = shalt.err (!%p803_p11)
}
  0x3e   : > { %705 = dma.hbm_to_vmem [thread:$0]  (!%p956_p12), %s1484_s1, 288, %s960_s25, [#allocation6]  }
  0x3f   : > { %p1492_p13 = scmp.ne.s32.totalorder %s1490_s21, 0 }
  0x40   : > { %p1493_p6 = scmp.eq.s32.totalorder (!%p1492_p13), %s920_s13, 0 }
  0x41   : > { %127 = sbr.rel (%p1492_p13) target bundleno = 170 (0xaa), region = 28 }
  0x48   : > { %852 = dma.done.wait (%p1493_p6), [#allocation3], 288   ;;  %p1494_p0 = pmov %p1493_p6 }
  0x4a   : > { %854 = vsyncadd (%p1494_p0), [#allocation3], 4294967008  ;;  %p1495_p5 = pmov %p1494_p0 }
  0x4b   : > { %p1496_p9 = pmov %p1494_p0 }
  0x4c   : > { %856 = dma.done.wait (%p1495_p5), [#allocation6], 288  }
  0x4d   : > { %858 = vsyncadd (%p1496_p9), [#allocation6], 4294967008  ;;  %s145_s26 = sand.u32 1, %s869_s10   ;;  %s678_s25 = sshll.u32 %s920_s13, 5  ;;  %v155_v0 = vlaneseq  ;;  %v165_v12 = vld [vmem:[#allocation2] sm:$0xff]  ;;  %v172_v13 = vld [vmem:[#allocation5] sm:$0xff] }
  0x4e   : > { %v1021_v1 = vstv %s678_s25  ;;  %s1032_s21 = smul.u32 576, %s145_s26  ;;  %v166_v38 = vld [vmem:[#allocation2 + $0x8] sm:$0xff]  ;;  %v173_v39 = vld [vmem:[#allocation5 + $0x8] sm:$0xff]  ;;  %s1422_s4 = scalar_lea.sflag [#allocation4], %s145_s26 }
  0x4f   : > { %v156_v2 = vshrl.u32 %v155_v0, 7  ;;  %p1497_p12 = scmp.ne.s32.totalorder %s1488_s19, 0 }
  0x50   : > { %s1107_s3 = scalar_lea.vmem [#allocation7], %s1032_s21  ;;  %s679_s5 = sshll.u32 (%p1497_p12), %s920_s13, 2 }
  0x51   : > { %v161_v3 = vadd.s32 %v1021_v1, %v156_v2  ;;  %v1024_v4 = vsub.s32 0, %v156_v2  ;;  %v1026_v5 = vsub.s32 1, %v156_v2  ;;  %v188_v6 = vsub.s32 2, %v156_v2  ;;  %s586_s6 = ssub.s32 (%p1497_p12), 7, %s679_s5 }
  0x52   : > { %v1028_v7 = vsub.s32 3, %v156_v2  ;;  %v1036_v9 = vsub.s32 4, %v156_v2  ;;  %v1038_v10 = vsub.s32 5, %v156_v2  ;;  %v1040_v11 = vsub.s32 6, %v156_v2  ;;  %p587_p10 = scmp.lt.s32.totalorder (%p1497_p12), %s586_s6, 4 }
  0x53   : > { %v1034_v8 = vcvt.s32.f32 %v161_v3  ;;  %v1042_v14 = vsub.s32 7, %v156_v2  ;;  %v1044_v15 = vadd.s32 8, %v156_v2  ;;  %v1046_v16 = vadd.s32 16, %v156_v2 }
  0x54   : > { %v1048_v17 = vadd.s32 24, %v156_v2  ;;  %v1051_v18 = vrot.slane %v172_v13, %v1024_v4  ;;  %v1054_v19 = vrot.slane %v165_v12, %v1024_v4  ;;  %v1057_v20 = vrot.slane %v172_v13, %v1026_v5 }
  0x55   : > { %v1060_v21 = vrot.slane %v165_v12, %v1026_v5  ;;  %v1062_v22 = vrot.slane %v172_v13, %v188_v6  ;;  %v1064_v23 = vrot.slane %v165_v12, %v188_v6  ;;  %v1067_v24 = vrot.slane %v172_v13, %v1028_v7 }
  0x56   : > { %v1070_v25 = vrot.slane %v165_v12, %v1028_v7  ;;  %v268_v26 = vmul.f32 %v1051_v18, %v1034_v8  ;;  %v269_v27 = vmul.f32 %v1057_v20, %v1034_v8  ;;  %v1077_v28 = vrot.slane %v172_v13, %v1036_v9 }
  0x57   : > { %v1080_v29 = vrot.slane %v165_v12, %v1036_v9  ;;  %v270_v30 = vmul.f32 %v1062_v22, %v1034_v8  ;;  %v271_v31 = vmul.f32 %v1067_v24, %v1034_v8  ;;  %v1087_v32 = vrot.slane %v172_v13, %v1038_v10 }
  0x58   : > { %v1090_v33 = vrot.slane %v165_v12, %v1038_v10  ;;  %v433_v34 = vadd.f32 %v1054_v19, %v268_v26  ;;  %v434_v35 = vadd.f32 %v1060_v21, %v269_v27  ;;  %v272_v36 = vmul.f32 %v1077_v28, %v1034_v8 }
  0x59   : > { %v1097_v37 = vrot.slane %v172_v13, %v1040_v11  ;;  %v435_v40 = vadd.f32 %v1064_v23, %v270_v30  ;;  %v436_v41 = vadd.f32 %v1070_v25, %v271_v31  ;;  %v273_v42 = vmul.f32 %v1087_v32, %v1034_v8  ;;  %v167_v30 = vld [vmem:[#allocation2 + $0x10] sm:$0x3] }
  0x5a   : > { %v1104_v43 = vrot.slane %v165_v12, %v1040_v11  ;;  %505 = vst [vmem:[%s1107_s3] sm:$0xff] %v433_v34  ;;  %506 = vst [vmem:[%s1107_s3 + $0x8] sm:$0xff] %v434_v35  ;;  %v437_v44 = vadd.f32 %v1080_v29, %v272_v36  ;;  %v1115_v46 = vrot.slane %v172_v13, %v1042_v14 }
  0x5b   : > { %v274_v45 = vmul.f32 %v1097_v37, %v1034_v8  ;;  %v1118_v47 = vrot.slane %v165_v12, %v1042_v14  ;;  %507 = vst [vmem:[%s1107_s3 + $0x10] sm:$0xff] %v435_v40  ;;  %508 = vst [vmem:[%s1107_s3 + $0x18] sm:$0xff] %v436_v41  ;;  %v438_v48 = vadd.f32 %v1090_v33, %v273_v42  ;;  %v174_v12 = vld [vmem:[#allocation5 + $0x10] sm:$0x3] }
  0x5c   : > { %v1124_v49 = vrot.slane %v173_v39, %v1024_v4  ;;  %v1127_v50 = vrot.slane %v166_v38, %v1024_v4  ;;  %v1130_v51 = vrot.slane %v173_v39, %v1026_v5  ;;  %509 = vst [vmem:[%s1107_s3 + $0x20] sm:$0xff] %v437_v44  ;;  %v275_v53 = vmul.f32 %v1115_v46, %v1034_v8 }
  0x5d   : > { %v439_v52 = vadd.f32 %v1104_v43, %v274_v45  ;;  %v1137_v54 = vrot.slane %v166_v38, %v1026_v5  ;;  %v1139_v55 = vrot.slane %v173_v39, %v188_v6  ;;  %510 = vst [vmem:[%s1107_s3 + $0x28] sm:$0xff] %v438_v48  ;;  %v1146_v58 = vrot.slane %v166_v38, %v188_v6 }
  0x5e   : > { %v276_v56 = vmul.f32 %v1124_v49, %v1034_v8  ;;  %v277_v57 = vmul.f32 %v1130_v51, %v1034_v8  ;;  %v1149_v59 = vrot.slane %v173_v39, %v1028_v7  ;;  %v440_v60 = vadd.f32 %v1118_v47, %v275_v53 }
  0x5f   : > { %511 = vst [vmem:[%s1107_s3 + $0x30] sm:$0xff] %v439_v52  ;;  %v278_v61 = vmul.f32 %v1139_v55, %v1034_v8  ;;  %v1156_v62 = vrot.slane %v166_v38, %v1028_v7  ;;  %v1159_v63 = vrot.slane %v173_v39, %v1036_v9  ;;  %v1166_v6 = vrot.slane %v166_v38, %v1036_v9 }
  0x60   : > { %v441_v0 = vadd.f32 %v1127_v50, %v276_v56  ;;  %v442_v2 = vadd.f32 %v1137_v54, %v277_v57  ;;  %v279_v3 = vmul.f32 %v1149_v59, %v1034_v8  ;;  %512 = vst [vmem:[%s1107_s3 + $0x38] sm:$0xff] %v440_v60  ;;  %v1173_v26 = vrot.slane %v173_v39, %v1038_v10 }
  0x61   : > { %v443_v13 = vadd.f32 %v1146_v58, %v278_v61  ;;  %v280_v7 = vmul.f32 %v1159_v63, %v1034_v8  ;;  %v1176_v27 = vrot.slane %v166_v38, %v1038_v10  ;;  %v1182_v31 = vrot.slane %v173_v39, %v1040_v11 }
  0x62   : > { %513 = vst [vmem:[%s1107_s3 + $0x40] sm:$0xff] %v441_v0  ;;  %514 = vst [vmem:[%s1107_s3 + $0x48] sm:$0xff] %v442_v2  ;;  %v444_v9 = vadd.f32 %v1156_v62, %v279_v3  ;;  %v1185_v34 = vrot.slane %v166_v38, %v1040_v11  ;;  %v1188_v35 = vrot.slane %v173_v39, %v1042_v14 }
  0x63   : > { %515 = vst [vmem:[%s1107_s3 + $0x50] sm:$0xff] %v443_v13  ;;  %v445_v36 = vadd.f32 %v1166_v6, %v280_v7  ;;  %v281_v10 = vmul.f32 %v1173_v26, %v1034_v8  ;;  %v1195_v40 = vrot.slane %v166_v38, %v1042_v14  ;;  %v1198_v41 = vrot.slane %v174_v12, %v1024_v4 }
  0x64   : > { %516 = vst [vmem:[%s1107_s3 + $0x58] sm:$0xff] %v444_v9  ;;  %v282_v11 = vmul.f32 %v1182_v31, %v1034_v8  ;;  %v283_v39 = vmul.f32 %v1188_v35, %v1034_v8  ;;  %v1206_v42 = vrot.slane %v167_v30, %v1024_v4  ;;  %v1209_v44 = vrot.slane %v174_v12, %v1026_v5 }
  0x65   : > { %517 = vst [vmem:[%s1107_s3 + $0x60] sm:$0xff] %v445_v36  ;;  %v446_v14 = vadd.f32 %v1176_v27, %v281_v10  ;;  %v284_v38 = vmul.f32 %v1198_v41, %v1034_v8  ;;  %v1216_v45 = vrot.slane %v167_v30, %v1026_v5  ;;  %v162_v48 = vadd.s32 %v1021_v1, %v1044_v15 }
  0x66   : > { %v447_v52 = vadd.f32 %v1185_v34, %v282_v11  ;;  %v448_v4 = vadd.f32 %v1195_v40, %v283_v39  ;;  %v285_v53 = vmul.f32 %v1209_v44, %v1034_v8  ;;  %v163_v56 = vadd.s32 %v1021_v1, %v1046_v16 }
  0x67   : > { %518 = vst [vmem:[%s1107_s3 + $0x68] sm:$0xff] %v446_v14  ;;  %v449_v57 = vadd.f32 %v1206_v42, %v284_v38  ;;  %v169_v60 = vcvt.s32.f32 %v162_v48  ;;  %v1235_v61 = vadd.s32 %v1021_v1, %v1048_v17 }
  0x68   : > { %519 = vst [vmem:[%s1107_s3 + $0x70] sm:$0xff] %v447_v52  ;;  %520 = vst [vmem:[%s1107_s3 + $0x78] sm:$0xff] %v448_v4  ;;  %v450_v5 = vadd.f32 %v1216_v45, %v285_v53  ;;  %v1231_v15 = vcvt.s32.f32 %v163_v56 }
  0x69   : > { %521 = vst [vmem:[%s1107_s3 + $0x80] sm:$0xff] %v449_v57  ;;  %v286_v8 = vmul.f32 %v1051_v18, %v169_v60  ;;  %v287_v0 = vmul.f32 %v1057_v20, %v169_v60  ;;  %v288_v16 = vmul.f32 %v1062_v22, %v169_v60  ;;  %v289_v2 = vmul.f32 %v1067_v24, %v169_v60 }
  0x6a   : > { %522 = vst [vmem:[%s1107_s3 + $0x88] sm:$0xff] %v450_v5  ;;  %v290_v3 = vmul.f32 %v1077_v28, %v169_v60  ;;  %v291_v12 = vmul.f32 %v1087_v32, %v169_v60  ;;  %v292_v1 = vmul.f32 %v1097_v37, %v169_v60  ;;  %v293_v17 = vmul.f32 %v1115_v46, %v169_v60 }
  0x6b   : > { %v451_v13 = vadd.f32 %v1054_v19, %v286_v8  ;;  %v452_v7 = vadd.f32 %v1060_v21, %v287_v0  ;;  %v453_v30 = vadd.f32 %v1064_v23, %v288_v16  ;;  %v454_v9 = vadd.f32 %v1070_v25, %v289_v2 }
  0x6c   : > { %v455_v36 = vadd.f32 %v1080_v29, %v290_v3  ;;  %v456_v10 = vadd.f32 %v1090_v33, %v291_v12  ;;  %v457_v11 = vadd.f32 %v1104_v43, %v292_v1  ;;  %v458_v39 = vadd.f32 %v1118_v47, %v293_v17 }
  0x6d   : > { %523 = vst [vmem:[%s1107_s3 + $0x90] sm:$0xff] %v451_v13  ;;  %524 = vst [vmem:[%s1107_s3 + $0x98] sm:$0xff] %v452_v7  ;;  %v294_v14 = vmul.f32 %v1124_v49, %v169_v60  ;;  %v295_v38 = vmul.f32 %v1130_v51, %v169_v60  ;;  %v296_v48 = vmul.f32 %v1139_v55, %v169_v60 }
  0x6e   : > { %525 = vst [vmem:[%s1107_s3 + $0xa0] sm:$0xff] %v453_v30  ;;  %526 = vst [vmem:[%s1107_s3 + $0xa8] sm:$0xff] %v454_v9  ;;  %v297_v52 = vmul.f32 %v1149_v59, %v169_v60  ;;  %v298_v4 = vmul.f32 %v1159_v63, %v169_v60  ;;  %v299_v53 = vmul.f32 %v1173_v26, %v169_v60 }
  0x6f   : > { %527 = vst [vmem:[%s1107_s3 + $0xb0] sm:$0xff] %v455_v36  ;;  %528 = vst [vmem:[%s1107_s3 + $0xb8] sm:$0xff] %v456_v10  ;;  %v300_v56 = vmul.f32 %v1182_v31, %v169_v60  ;;  %v301_v57 = vmul.f32 %v1188_v35, %v169_v60  ;;  %v459_v5 = vadd.f32 %v1127_v50, %v294_v14 }
  0x70   : > { %529 = vst [vmem:[%s1107_s3 + $0xc0] sm:$0xff] %v457_v11  ;;  %530 = vst [vmem:[%s1107_s3 + $0xc8] sm:$0xff] %v458_v39  ;;  %v460_v8 = vadd.f32 %v1137_v54, %v295_v38  ;;  %v461_v0 = vadd.f32 %v1146_v58, %v296_v48  ;;  %v462_v16 = vadd.f32 %v1156_v62, %v297_v52 }
  0x71   : > { %v463_v2 = vadd.f32 %v1166_v6, %v298_v4  ;;  %v464_v3 = vadd.f32 %v1176_v27, %v299_v53  ;;  %v465_v12 = vadd.f32 %v1185_v34, %v300_v56  ;;  %v466_v1 = vadd.f32 %v1195_v40, %v301_v57  ;;  %531 = vst [vmem:[%s1107_s3 + $0xd0] sm:$0xff] %v459_v5 }
  0x72   : > { %532 = vst [vmem:[%s1107_s3 + $0xd8] sm:$0xff] %v460_v8  ;;  %533 = vst [vmem:[%s1107_s3 + $0xe0] sm:$0xff] %v461_v0  ;;  %v302_v17 = vmul.f32 %v1198_v41, %v169_v60  ;;  %v303_v13 = vmul.f32 %v1209_v44, %v169_v60  ;;  %v304_v7 = vmul.f32 %v1051_v18, %v1231_v15 }
  0x73   : > { %534 = vst [vmem:[%s1107_s3 + $0xe8] sm:$0xff] %v462_v16  ;;  %v305_v30 = vmul.f32 %v1057_v20, %v1231_v15  ;;  %535 = vst [vmem:[%s1107_s3 + $0xf0] sm:$0xff] %v463_v2  ;;  %v306_v9 = vmul.f32 %v1062_v22, %v1231_v15  ;;  %v307_v60 = vmul.f32 %v1067_v24, %v1231_v15 }
  0x74   : > { %536 = vst [vmem:[%s1107_s3 + $0xf8] sm:$0xff] %v464_v3  ;;  %537 = vst [vmem:[%s1107_s3 + $0x100] sm:$0xff] %v465_v12  ;;  %v308_v36 = vmul.f32 %v1077_v28, %v1231_v15  ;;  %v309_v10 = vmul.f32 %v1087_v32, %v1231_v15  ;;  %v467_v11 = vadd.f32 %v1206_v42, %v302_v17 }
  0x75   : > { %538 = vst [vmem:[%s1107_s3 + $0x108] sm:$0xff] %v466_v1  ;;  %v468_v39 = vadd.f32 %v1216_v45, %v303_v13  ;;  %v469_v14 = vadd.f32 %v1054_v19, %v304_v7  ;;  %v470_v38 = vadd.f32 %v1060_v21, %v305_v30  ;;  %v471_v48 = vadd.f32 %v1064_v23, %v306_v9 }
  0x76   : > { %v472_v52 = vadd.f32 %v1070_v25, %v307_v60  ;;  %v473_v4 = vadd.f32 %v1080_v29, %v308_v36  ;;  %v474_v53 = vadd.f32 %v1090_v33, %v309_v10  ;;  %539 = vst [vmem:[%s1107_s3 + $0x110] sm:$0xff] %v467_v11  ;;  %v310_v56 = vmul.f32 %v1097_v37, %v1231_v15 }
  0x77   : > { %540 = vst [vmem:[%s1107_s3 + $0x118] sm:$0xff] %v468_v39  ;;  %541 = vst [vmem:[%s1107_s3 + $0x120] sm:$0xff] %v469_v14  ;;  %v311_v57 = vmul.f32 %v1115_v46, %v1231_v15  ;;  %v312_v5 = vmul.f32 %v1124_v49, %v1231_v15  ;;  %v313_v8 = vmul.f32 %v1130_v51, %v1231_v15  ;;  %v171_v14 = vcvt.s32.f32 %v1235_v61 }
  0x78   : > { %542 = vst [vmem:[%s1107_s3 + $0x128] sm:$0xff] %v470_v38  ;;  %543 = vst [vmem:[%s1107_s3 + $0x130] sm:$0xff] %v471_v48  ;;  %v314_v0 = vmul.f32 %v1139_v55, %v1231_v15  ;;  %v315_v16 = vmul.f32 %v1149_v59, %v1231_v15  ;;  %v316_v2 = vmul.f32 %v1159_v63, %v1231_v15 }
  0x79   : > { %544 = vst [vmem:[%s1107_s3 + $0x138] sm:$0xff] %v472_v52  ;;  %545 = vst [vmem:[%s1107_s3 + $0x140] sm:$0xff] %v473_v4  ;;  %v317_v3 = vmul.f32 %v1173_v26, %v1231_v15  ;;  %v475_v12 = vadd.f32 %v1104_v43, %v310_v56  ;;  %v476_v1 = vadd.f32 %v1118_v47, %v311_v57 }
  0x7a   : > { %546 = vst [vmem:[%s1107_s3 + $0x148] sm:$0xff] %v474_v53  ;;  %v477_v17 = vadd.f32 %v1127_v50, %v312_v5  ;;  %v478_v13 = vadd.f32 %v1137_v54, %v313_v8  ;;  %v479_v7 = vadd.f32 %v1146_v58, %v314_v0  ;;  %v480_v30 = vadd.f32 %v1156_v62, %v315_v16 }
  0x7b   : > { %v481_v9 = vadd.f32 %v1166_v6, %v316_v2  ;;  %v482_v60 = vadd.f32 %v1176_v27, %v317_v3  ;;  %547 = vst [vmem:[%s1107_s3 + $0x150] sm:$0xff] %v475_v12  ;;  %548 = vst [vmem:[%s1107_s3 + $0x158] sm:$0xff] %v476_v1  ;;  %v318_v36 = vmul.f32 %v1182_v31, %v1231_v15 }
  0x7c   : > { %549 = vst [vmem:[%s1107_s3 + $0x160] sm:$0xff] %v477_v17  ;;  %550 = vst [vmem:[%s1107_s3 + $0x168] sm:$0xff] %v478_v13  ;;  %v319_v10 = vmul.f32 %v1188_v35, %v1231_v15  ;;  %v320_v11 = vmul.f32 %v1198_v41, %v1231_v15  ;;  %v321_v39 = vmul.f32 %v1209_v44, %v1231_v15 }
  0x7d   : > { %551 = vst [vmem:[%s1107_s3 + $0x170] sm:$0xff] %v479_v7  ;;  %552 = vst [vmem:[%s1107_s3 + $0x178] sm:$0xff] %v480_v30  ;;  %v483_v38 = vadd.f32 %v1185_v34, %v318_v36  ;;  %v322_v53 = vmul.f32 %v1051_v18, %v171_v14  ;;  %v323_v15 = vmul.f32 %v1057_v20, %v171_v14 }
  0x7e   : > { %553 = vst [vmem:[%s1107_s3 + $0x180] sm:$0xff] %v481_v9  ;;  %554 = vst [vmem:[%s1107_s3 + $0x188] sm:$0xff] %v482_v60  ;;  %v484_v48 = vadd.f32 %v1195_v40, %v319_v10  ;;  %v485_v52 = vadd.f32 %v1206_v42, %v320_v11  ;;  %v486_v4 = vadd.f32 %v1216_v45, %v321_v39 }
  0x7f   : > { %v324_v56 = vmul.f32 %v1062_v22, %v171_v14  ;;  %v325_v57 = vmul.f32 %v1067_v24, %v171_v14  ;;  %555 = vst [vmem:[%s1107_s3 + $0x190] sm:$0xff] %v483_v38  ;;  %v326_v61 = vmul.f32 %v1077_v28, %v171_v14  ;;  %v327_v5 = vmul.f32 %v1087_v32, %v171_v14 }
  0x80   : > { %556 = vst [vmem:[%s1107_s3 + $0x198] sm:$0xff] %v484_v48  ;;  %557 = vst [vmem:[%s1107_s3 + $0x1a0] sm:$0xff] %v485_v52  ;;  %v328_v18 = vmul.f32 %v1097_v37, %v171_v14  ;;  %v329_v20 = vmul.f32 %v1115_v46, %v171_v14  ;;  %v487_v22 = vadd.f32 %v1054_v19, %v322_v53 }
  0x81   : > { %558 = vst [vmem:[%s1107_s3 + $0x1a8] sm:$0xff] %v486_v4  ;;  %v488_v24 = vadd.f32 %v1060_v21, %v323_v15  ;;  %v489_v8 = vadd.f32 %v1064_v23, %v324_v56  ;;  %v490_v0 = vadd.f32 %v1070_v25, %v325_v57  ;;  %v491_v28 = vadd.f32 %v1080_v29, %v326_v61 }
  0x82   : > { %v492_v32 = vadd.f32 %v1090_v33, %v327_v5  ;;  %v493_v37 = vadd.f32 %v1104_v43, %v328_v18  ;;  %v494_v46 = vadd.f32 %v1118_v47, %v329_v20  ;;  %559 = vst [vmem:[%s1107_s3 + $0x1b0] sm:$0xff] %v487_v22  ;;  %v330_v19 = vmul.f32 %v1124_v49, %v171_v14 }
  0x83   : > { %560 = vst [vmem:[%s1107_s3 + $0x1b8] sm:$0xff] %v488_v24  ;;  %561 = vst [vmem:[%s1107_s3 + $0x1c0] sm:$0xff] %v489_v8  ;;  %v331_v21 = vmul.f32 %v1130_v51, %v171_v14  ;;  %v332_v23 = vmul.f32 %v1139_v55, %v171_v14  ;;  %v333_v25 = vmul.f32 %v1149_v59, %v171_v14 }
  0x84   : > { %562 = vst [vmem:[%s1107_s3 + $0x1c8] sm:$0xff] %v490_v0  ;;  %563 = vst [vmem:[%s1107_s3 + $0x1d0] sm:$0xff] %v491_v28  ;;  %v334_v29 = vmul.f32 %v1159_v63, %v171_v14  ;;  %v335_v33 = vmul.f32 %v1173_v26, %v171_v14  ;;  %v336_v43 = vmul.f32 %v1182_v31, %v171_v14 }
  0x85   : > { %564 = vst [vmem:[%s1107_s3 + $0x1d8] sm:$0xff] %v492_v32  ;;  %565 = vst [vmem:[%s1107_s3 + $0x1e0] sm:$0xff] %v493_v37  ;;  %v337_v47 = vmul.f32 %v1188_v35, %v171_v14  ;;  %v495_v49 = vadd.f32 %v1127_v50, %v330_v19  ;;  %v496_v51 = vadd.f32 %v1137_v54, %v331_v21 }
  0x86   : > { %566 = vst [vmem:[%s1107_s3 + $0x1e8] sm:$0xff] %v494_v46  ;;  %v497_v55 = vadd.f32 %v1146_v58, %v332_v23  ;;  %v498_v59 = vadd.f32 %v1156_v62, %v333_v25  ;;  %v499_v63 = vadd.f32 %v1166_v6, %v334_v29  ;;  %v500_v26 = vadd.f32 %v1176_v27, %v335_v33  ;;  %584 = sbr.rel (!%p1497_p12) target bundleno = 170 (0xaa), region = 40 }
  0x87   : > { %v501_v31 = vadd.f32 %v1185_v34, %v336_v43  ;;  %v502_v35 = vadd.f32 %v1195_v40, %v337_v47  ;;  %567 = vst [vmem:[%s1107_s3 + $0x1f0] sm:$0xff] %v495_v49  ;;  %568 = vst [vmem:[%s1107_s3 + $0x1f8] sm:$0xff] %v496_v51  ;;  %v338_v50 = vmul.f32 %v1198_v41, %v171_v14 }
  0x88   : > { %569 = vst [vmem:[%s1107_s3 + $0x200] sm:$0xff] %v497_v55  ;;  %570 = vst [vmem:[%s1107_s3 + $0x208] sm:$0xff] %v498_v59  ;;  %v339_v54 = vmul.f32 %v1209_v44, %v171_v14 }
  0x89   : > { %571 = vst [vmem:[%s1107_s3 + $0x210] sm:$0xff] %v499_v63  ;;  %572 = vst [vmem:[%s1107_s3 + $0x218] sm:$0xff] %v500_v26  ;;  %v503_v58 = vadd.f32 %v1206_v42, %v338_v50 }
  0x8a   : > { %573 = vst [vmem:[%s1107_s3 + $0x220] sm:$0xff] %v501_v31  ;;  %574 = vst [vmem:[%s1107_s3 + $0x228] sm:$0xff] %v502_v35  ;;  %v504_v62 = vadd.f32 %v1216_v45, %v339_v54 }
  0x8b   : > { %575 = vst [vmem:[%s1107_s3 + $0x230] sm:$0xff] %v503_v58 }
  0x8c   : > { %576 = vst [vmem:[%s1107_s3 + $0x238] sm:$0xff] %v504_v62 }
  0x8d   : > { %s1504_s6 = smov (!%p587_p10, %s586_s6), 4 }
  0x8e   : > { %s1427_s7 = smul.u32 2304, %s1504_s6 }
  0x90   : > { %s592_s8 = ssub.s32 9216, %s1427_s7 }
  0x91   : > { %593 = vsyncadd %s1422_s4, %s592_s8  ;;  %p682_p1 = scmp.ne.s32.totalorder %s1427_s7, 0  ;;  %s689_s14 = smul.u32 9216, %s920_s13 }
  0x92   : > { %s599_s19 = sshll.u32 %s1107_s3, 4  ;;  %s881_s27 = smov [#allocation7]   ;;  %s1439_s19 = int_to_ptr.vmem [resolvable:$true] %s599_s19 }
  0x93   : > { %s1437_s22 = scalar_lea.hbm %s1485_s2, %s689_s14  ;;  %s807_s24 = scalar_lea.vmem %s1439_s19, %s1427_s7 }
  0x94   : > { %p808_p2 = scmp.ne.s32.totalorder %s1439_s19, %s807_s24  ;;  %s811_s28 = sshll.u32 %s881_s27, 4  ;;  %s812_s28 = int_to_ptr.vmem [resolvable:$false] %s811_s28 }
  0x95   : > { %s813_s13 = scalar_lea.vmem %s812_s28, 18432  ;;  %p814_p7 = scmp.lt.s32.totalorder %s1439_s19, %s812_s28 }
  0x96   : > { %p809_p3 = pnand %p808_p2, %p682_p1  ;;  %p815_p8 = scmp.lt.s32.totalorder %s813_s13, %s807_s24 }
  0x98   : > { %p810_p4 = pneg %p809_p3  ;;  %p816_p11 = por %p815_p8, %p814_p7 }
  0x9a   : > { %p817_p13 = pnand %p816_p11, %p810_p4 }
  0x9c   : > { %820 = shalt.err (!%p817_p13)
}
  0x9d   : > { %s821_s23 = scalar_lea.hbm %s1437_s22, %s1427_s7  ;;  %s825_s26 = scalar_lea.hbm %s1485_s2, 16128 }
  0x9e   : > { %p822_p6 = scmp.ne.s32.totalorder %s1437_s22, %s821_s23  ;;  %p826_p9 = scmp.lt.u32.totalorder %s1437_s22, %s1485_s2 }
  0x9f   : > { %p827_p12 = scmp.lt.u32.totalorder %s825_s26, %s821_s23  ;;  %p829_p2 = scmp.lt.u32.totalorder %s821_s23, %s1437_s22 }
  0xa0   : > { %p823_p0 = pnand %p822_p6, %p682_p1 }
  0xa1   : > { %p828_p10 = por %p827_p12, %p826_p9 }
  0xa2   : > { %p824_p5 = pneg %p823_p0 }
  0xa3   : > { %p830_p3 = por %p829_p2, %p828_p10 }
  0xa5   : > { %p831_p4 = pnand %p830_p3, %p824_p5 }
  0xa7   : > { %834 = shalt.err (!%p831_p4)
}
  0xa8   : > { %s882_s3 = smov 2304   ;;  %s883_s5 = smov 144  }
  0xa9   : > { %605 = dma.vmem_to_hbm [thread:$0]  (%p682_p1), %s1439_s19, %s1427_s7, %s1437_s22, %s1422_s4, %s882_s3, %s882_s3, %s883_s5  }
  0xaa PF: > { %p714_p7 = scmp.ge.s32.totalorder %s877_s12, 2  ;;  %s614_s6 = sand.u32 1, %s865_s9  }
  0xab   : > { %p1498_p8 = scmp.ne.s32.totalorder %s1489_s20, 0  ;;  %s615_s8 = scalar_lea.sflag [#allocation4], %s614_s6 }
  0xad   : > { %p707_p11 = pnand %p714_p7, %p1498_p8 }
  0xaf   : > { %860 = dma.done.wait (!%p707_p11), %s615_s8, 9216  }
  0xb0   : > { %862 = vsyncadd (!%p707_p11), %s615_s8, 4294958080  ;;  %p14_p13 = scmp.ge.s32.totalorder %s924_s15, 4   ;;  %s1499_s9 = smov %s869_s10 }
  0xb1   : > { %s1500_s10 = smov %s873_s11  ;;  %s1501_s11 = smov %s935_s18 }
  0xb2   : > { %s1502_s12 = smov %s924_s15  ;;  %16 = sbr.rel (!%p14_p13) target bundleno = 5 (0x5), region = 69 }
  0xb9   :  { %620 = vsyncpa [#allocation3], 1 }
  0xba   :  { %622 = vsyncpa [#allocation3 + $0x1], 1 }
  0xbb   :  { %623 = vsyncpa [#allocation6], 1 }
  0xbc   :  { %624 = vsyncpa [#allocation4], 1 }
  0xbd   :  { %626 = vsyncpa [#allocation4 + $0x1], 1 }

</bundles_post_ra>
